<compile_context>
chip_gen: v7x
topology: tpu7x:2x2x1
jax: 0.10.0
libtpu: 0.0.40
codegen_flags: <defaults>
</compile_context>

<pallas_src>
import jax
import jax.numpy as jnp
from jax import lax
from jax.experimental import pallas as pl
from jax.experimental.pallas import tpu as pltpu

HIDDEN = 32
INPUT = 1
NUM_LAYERS = 2          # hard-coded two-layer recurrence below


def _rnn_fc_kernel(x_ref,                       # (T, Bt)    time-major input
                   wih0_ref,                    # (H, 1)     W_ih layer 0
                   b0_ref,                      # (H, 1)     b_ih0 + b_hh0
                   wfused_ref,                  # (2H, 2H)   [[Whh0, 0],[Wih1, Whh1]]
                   b1_ref,                      # (H, 1)     b_ih1 + b_hh1
                   wfc_ref,                     # (1, H)     W_fc
                   bfc_ref,                     # (1, 1)     b_fc (SMEM scalar)
                   out_ref):                    # (1, Bt)    lane-dense output
    T, Bt = x_ref.shape
    H = wih0_ref.shape[0]

    # Hoist weights and loop-invariant broadcasts out of the (unrolled) time
    # loop; JAX does not CSE broadcast_in_dim, so these would otherwise be
    # re-emitted every unrolled iteration next to the tanh on the crit path.
    wfused = wfused_ref[...]                                   # (2H, 2H)
    wih0_b = jnp.broadcast_to(wih0_ref[...], (H, Bt))          # (H, Bt)
    b0_b = jnp.broadcast_to(b0_ref[...], (H, Bt))              # (H, Bt)
    b1_b = jnp.broadcast_to(b1_ref[...], (H, Bt))              # (H, Bt)

    # Prologue of the skewed recurrence:
    #   h1_0 = tanh(W_ih0 * x_0 + b0)   (h1_{-1} = 0),   h2_{-1} = 0
    x0 = x_ref[pl.ds(0, 1), :]                                 # (1, Bt)
    h1_0 = jnp.tanh(wih0_b * x0 + b0_b)                        # (H, Bt)
    carry0 = jnp.concatenate(
        [h1_0, jnp.zeros((H, Bt), jnp.float32)], axis=0)       # [h1_0 ; h2_{-1}]

    def step(t, carry):
        # carry = [h1_t ; h2_{t-1}]
        # One fused matmul:
        #   z[:H] = Whh0 @ h1_t
        #   z[H:] = Wih1 @ h1_t + Whh1 @ h2_{t-1}
        z = jnp.dot(wfused, carry, preferred_element_type=jnp.float32)  # (2H, Bt)

        # Layer-0 input projection for the NEXT step: INPUT == 1, so it is an
        # outer-product broadcast on the VPU, independent of the carry.
        x_next = x_ref[pl.ds(t + 1, 1), :]                     # (1, Bt)
        h1_next = jnp.tanh(z[:H] + wih0_b * x_next + b0_b)     # h1_{t+1}
        h2_cur = jnp.tanh(z[H:] + b1_b)                        # h2_t
        return jnp.concatenate([h1_next, h2_cur], axis=0)      # [h1_{t+1} ; h2_t]

    # Skewed loop runs T-1 steps; epilogue below finishes h2_{T-1}.
    steps = T - 1
    unroll = True if steps <= 32 else 4
    carry_last = lax.fori_loop(0, steps, step, carry0, unroll=unroll)
    # carry_last = [h1_{T-1} ; h2_{T-2}]

    # Epilogue: h2_{T-1} = tanh(Wih1 @ h1_{T-1} + Whh1 @ h2_{T-2} + b1)
    z_bot = jnp.dot(wfused[H:, :], carry_last,
                    preferred_element_type=jnp.float32)        # (H, Bt)
    h2_last = jnp.tanh(z_bot + b1_b)

    # fc on the last timestep of the top layer; (1, Bt) store is lane-dense.
    out_ref[...] = (jnp.dot(wfc_ref[...], h2_last,
                            preferred_element_type=jnp.float32)
                    + bfc_ref[0, 0]).astype(out_ref.dtype)


def net_forward(x, params, batch_tile=None):
    """x: (B, T, 1) float32 (PyTorch batch_first). Returns (B, 1) float32."""
    B, T, _ = x.shape
    H = HIDDEN

    if batch_tile is None:
        # 256 lanes fills the 256-wide MXU on v6e/v7x and keeps >=2 grid tiles
        # for megacore at large B; 128 otherwise (and always force 128 on v5e).
        batch_tile = 256 if B > 128 else 128
    B_pad = pl.cdiv(B, batch_tile) * batch_tile

    # Time-major, drop the trailing size-1 input dim, batch in lanes,
    # zero-pad batch up to a full lane tile (padded columns discarded below).
    x_tb = jnp.transpose(x[:, :, 0]).astype(jnp.float32)            # (T, B)
    x_tb = jnp.pad(x_tb, ((0, 0), (0, B_pad - B)))                  # (T, B_pad)

    # Column-vector weight layout (h is (H, B)): h_t = tanh(W_ih x + W_hh h + b).
    wih0 = params["w_ih_l0"].astype(jnp.float32)                    # (H, 1)
    b0 = (params["b_ih_l0"] + params["b_hh_l0"]).reshape(H, 1).astype(jnp.float32)
    # Skewed fused matrix: [[Whh0, 0], [Wih1, Whh1]]
    wfused = jnp.zeros((2 * H, 2 * H), jnp.float32)
    wfused = wfused.at[:H, :H].set(params["w_hh_l0"].astype(jnp.float32))
    wfused = wfused.at[H:, :H].set(params["w_ih_l1"].astype(jnp.float32))
    wfused = wfused.at[H:, H:].set(params["w_hh_l1"].astype(jnp.float32))
    b1 = (params["b_ih_l1"] + params["b_hh_l1"]).reshape(H, 1).astype(jnp.float32)
    wfc = params["w_fc"].astype(jnp.float32)                        # (1, H)
    bfc = params["b_fc"].reshape(1, 1).astype(jnp.float32)          # (1, 1)

    grid = (B_pad // batch_tile,)
    out = pl.pallas_call(
        _rnn_fc_kernel,
        out_shape=jax.ShapeDtypeStruct((1, B_pad), jnp.float32),
        grid=grid,
        in_specs=[
            pl.BlockSpec((T, batch_tile), lambda b: (0, b)),        # x tile
            pl.BlockSpec((H, 1), lambda b: (0, 0)),                 # W_ih l0
            pl.BlockSpec((H, 1), lambda b: (0, 0)),                 # b l0
            pl.BlockSpec((2 * H, 2 * H), lambda b: (0, 0)),         # fused W
            pl.BlockSpec((H, 1), lambda b: (0, 0)),                 # b l1
            pl.BlockSpec((1, H), lambda b: (0, 0)),                 # W_fc
            pl.BlockSpec(memory_space=pltpu.MemorySpace.SMEM),      # b_fc scalar
        ],
        out_specs=pl.BlockSpec((1, batch_tile), lambda b: (0, b)),
        compiler_params=pltpu.CompilerParams(
            dimension_semantics=("parallel",)),                     # batch tiles
    )(x_tb, wih0, b0, wfused, b1, wfc, bfc)

    # Drop batch padding, return PyTorch-shaped (B, 1).
    return out[:, :B].T


def init_params(key):
    """Deterministic init mimicking PyTorch's U(-1/sqrt(H), 1/sqrt(H))."""
    bound = 1.0 / jnp.sqrt(jnp.float32(HIDDEN))
    shapes = {
        "w_ih_l0": (HIDDEN, INPUT),
        "w_hh_l0": (HIDDEN, HIDDEN),
        "b_ih_l0": (HIDDEN,),
        "b_hh_l0": (HIDDEN,),
        "w_ih_l1": (HIDDEN, HIDDEN),
        "w_hh_l1": (HIDDEN, HIDDEN),
        "b_ih_l1": (HIDDEN,),
        "b_hh_l1": (HIDDEN,),
        "w_fc": (1, HIDDEN),
        "b_fc": (1,),
    }
    params = {}
    keys = jax.random.split(key, len(shapes))
    for k, (name, shp) in zip(keys, shapes.items()):
        params[name] = jax.random.uniform(
            k, shp, dtype=jnp.float32, minval=-bound, maxval=bound)
    return params


def _reference_forward(x, params):
    """Pure-JAX reference of the same two-layer RNN + fc (batch-first math)."""
    B, T, _ = x.shape
    h1 = jnp.zeros((B, HIDDEN), jnp.float32)
    h2 = jnp.zeros((B, HIDDEN), jnp.float32)
    for t in range(T):
        x_t = x[:, t, :]
        h1 = jnp.tanh(x_t @ params["w_ih_l0"].T + h1 @ params["w_hh_l0"].T
                      + params["b_ih_l0"] + params["b_hh_l0"])
        h2 = jnp.tanh(h1 @ params["w_ih_l1"].T + h2 @ params["w_hh_l1"].T
                      + params["b_ih_l1"] + params["b_hh_l1"])
    return h2 @ params["w_fc"].T + params["b_fc"]


if __name__ == "__main__":
    key = jax.random.PRNGKey(0)
    k_params, k_x = jax.random.split(key)

    B, T = 2, 8
    params = init_params(k_params)
    x = jax.random.normal(k_x, (B, T, 1), dtype=jnp.float32)

    out = net_forward(x, params)
    out = jax.block_until_ready(out)

    ref = _reference_forward(x, params)
    assert out.shape == (B, 1)
    assert jnp.allclose(out, ref, atol=1e-5, rtol=1e-5), (out, ref)
    print("KERNEL_OK")
</pallas_src>

<mosaic_0001>
module attributes {stable_mosaic.version = 11 : i64} {
  func.func @_rnn_fc_kernel(%arg0: i32, %arg1: memref<8x128xf32, #tpu.memory_space<vmem>>, %arg2: memref<32x1xf32, #tpu.memory_space<vmem>>, %arg3: memref<32x1xf32, #tpu.memory_space<vmem>>, %arg4: memref<64x64xf32, #tpu.memory_space<vmem>>, %arg5: memref<32x1xf32, #tpu.memory_space<vmem>>, %arg6: memref<1x32xf32, #tpu.memory_space<vmem>>, %arg7: memref<1x1xf32, #tpu.memory_space<smem>>, %arg8: memref<1x128xf32, #tpu.memory_space<vmem>>) attributes {dimension_semantics = [#tpu.dimension_semantics<parallel>], iteration_bounds = array<i64: 1>, scalar_prefetch = 0 : i64, scratch_operands = 0 : i64, tpu.core_type = #tpu.core_type<tc>, window_params = [{transform_indices = @transform_0, window_bounds = array<i64: 8, 128>}, {pipeline_mode = #tpu.pipeline_mode<synchronous>, transform_indices = @transform_1, window_bounds = array<i64: 32, 1>}, {pipeline_mode = #tpu.pipeline_mode<synchronous>, transform_indices = @transform_2, window_bounds = array<i64: 32, 1>}, {pipeline_mode = #tpu.pipeline_mode<synchronous>, transform_indices = @transform_3, window_bounds = array<i64: 64, 64>}, {pipeline_mode = #tpu.pipeline_mode<synchronous>, transform_indices = @transform_4, window_bounds = array<i64: 32, 1>}, {pipeline_mode = #tpu.pipeline_mode<synchronous>, transform_indices = @transform_5, window_bounds = array<i64: 1, 32>}, {transform_indices = @transform_6, window_bounds = array<i64: 1, 1>}, {transform_indices = @transform_7, window_bounds = array<i64: 1, 128>}]} {
    %c0 = arith.constant 0 : index
    %c0_0 = arith.constant 0 : index
    %0 = vector.load %arg4[%c0, %c0_0] : memref<64x64xf32, #tpu.memory_space<vmem>>, vector<64x64xf32>
    %c0_1 = arith.constant 0 : index
    %c0_2 = arith.constant 0 : index
    %1 = vector.load %arg2[%c0_1, %c0_2] : memref<32x1xf32, #tpu.memory_space<vmem>>, vector<32x1xf32>
    %2 = vector.shape_cast %1 : vector<32x1xf32> to vector<32x1xf32>
    %3 = vector.broadcast %2 : vector<32x1xf32> to vector<32x128xf32>
    %c0_3 = arith.constant 0 : index
    %c0_4 = arith.constant 0 : index
    %4 = vector.load %arg3[%c0_3, %c0_4] : memref<32x1xf32, #tpu.memory_space<vmem>>, vector<32x1xf32>
    %5 = vector.shape_cast %4 : vector<32x1xf32> to vector<32x1xf32>
    %6 = vector.broadcast %5 : vector<32x1xf32> to vector<32x128xf32>
    %c0_5 = arith.constant 0 : index
    %c0_6 = arith.constant 0 : index
    %7 = vector.load %arg5[%c0_5, %c0_6] : memref<32x1xf32, #tpu.memory_space<vmem>>, vector<32x1xf32>
    %8 = vector.shape_cast %7 : vector<32x1xf32> to vector<32x1xf32>
    %9 = vector.broadcast %8 : vector<32x1xf32> to vector<32x128xf32>
    %c0_7 = arith.constant 0 : index
    %c0_8 = arith.constant 0 : index
    %10 = vector.load %arg1[%c0_7, %c0_8] : memref<8x128xf32, #tpu.memory_space<vmem>>, vector<1x128xf32>
    %11 = vector.broadcast %10 : vector<1x128xf32> to vector<32x128xf32>
    %12 = arith.mulf %3, %11 : vector<32x128xf32>
    %13 = arith.addf %12, %6 : vector<32x128xf32>
    %14 = math.tanh %13 : vector<32x128xf32>
    %cst = arith.constant 0.000000e+00 : f32
    %15 = vector.broadcast %cst : f32 to vector<32x128xf32>
    %16 = tpu.concatenate %14, %15 in 0 : vector<32x128xf32>, vector<32x128xf32> -> vector<64x128xf32>
    %c0_i32 = arith.constant 0 : i32
    %cst_9 = arith.constant dense<0.000000e+00> : vector<64x128xf32>
    %17 = tpu.matmul %0, %16, %cst_9 {dimension_numbers = #tpu.dot_dimension_numbers<[1], [0], [0], [1], [0, 0, 1, 1], [], []>} : vector<64x64xf32>, vector<64x128xf32>, vector<64x128xf32> -> vector<64x128xf32>
    %c1_i32 = arith.constant 1 : i32
    %18 = arith.addi %c0_i32, %c1_i32 : i32
    %19 = arith.index_cast %18 : i32 to index
    %c0_10 = arith.constant 0 : index
    %20 = vector.load %arg1[%19, %c0_10] : memref<8x128xf32, #tpu.memory_space<vmem>>, vector<1x128xf32>
    %21 = vector.extract_strided_slice %17 {offsets = [0, 0], sizes = [32, 128], strides = [1, 1]} : vector<64x128xf32> to vector<32x128xf32>
    %22 = vector.broadcast %20 : vector<1x128xf32> to vector<32x128xf32>
    %23 = arith.mulf %3, %22 : vector<32x128xf32>
    %24 = arith.addf %21, %23 : vector<32x128xf32>
    %25 = arith.addf %24, %6 : vector<32x128xf32>
    %26 = math.tanh %25 : vector<32x128xf32>
    %27 = vector.extract_strided_slice %17 {offsets = [32, 0], sizes = [32, 128], strides = [1, 1]} : vector<64x128xf32> to vector<32x128xf32>
    %28 = arith.addf %27, %9 : vector<32x128xf32>
    %29 = math.tanh %28 : vector<32x128xf32>
    %30 = tpu.concatenate %26, %29 in 0 : vector<32x128xf32>, vector<32x128xf32> -> vector<64x128xf32>
    %c1_i32_11 = arith.constant 1 : i32
    %cst_12 = arith.constant dense<0.000000e+00> : vector<64x128xf32>
    %31 = tpu.matmul %0, %30, %cst_12 {dimension_numbers = #tpu.dot_dimension_numbers<[1], [0], [0], [1], [0, 0, 1, 1], [], []>} : vector<64x64xf32>, vector<64x128xf32>, vector<64x128xf32> -> vector<64x128xf32>
    %c1_i32_13 = arith.constant 1 : i32
    %32 = arith.addi %c1_i32_11, %c1_i32_13 : i32
    %33 = arith.index_cast %32 : i32 to index
    %c0_14 = arith.constant 0 : index
    %34 = vector.load %arg1[%33, %c0_14] : memref<8x128xf32, #tpu.memory_space<vmem>>, vector<1x128xf32>
    %35 = vector.extract_strided_slice %31 {offsets = [0, 0], sizes = [32, 128], strides = [1, 1]} : vector<64x128xf32> to vector<32x128xf32>
    %36 = vector.broadcast %34 : vector<1x128xf32> to vector<32x128xf32>
    %37 = arith.mulf %3, %36 : vector<32x128xf32>
    %38 = arith.addf %35, %37 : vector<32x128xf32>
    %39 = arith.addf %38, %6 : vector<32x128xf32>
    %40 = math.tanh %39 : vector<32x128xf32>
    %41 = vector.extract_strided_slice %31 {offsets = [32, 0], sizes = [32, 128], strides = [1, 1]} : vector<64x128xf32> to vector<32x128xf32>
    %42 = arith.addf %41, %9 : vector<32x128xf32>
    %43 = math.tanh %42 : vector<32x128xf32>
    %44 = tpu.concatenate %40, %43 in 0 : vector<32x128xf32>, vector<32x128xf32> -> vector<64x128xf32>
    %c2_i32 = arith.constant 2 : i32
    %cst_15 = arith.constant dense<0.000000e+00> : vector<64x128xf32>
    %45 = tpu.matmul %0, %44, %cst_15 {dimension_numbers = #tpu.dot_dimension_numbers<[1], [0], [0], [1], [0, 0, 1, 1], [], []>} : vector<64x64xf32>, vector<64x128xf32>, vector<64x128xf32> -> vector<64x128xf32>
    %c1_i32_16 = arith.constant 1 : i32
    %46 = arith.addi %c2_i32, %c1_i32_16 : i32
    %47 = arith.index_cast %46 : i32 to index
    %c0_17 = arith.constant 0 : index
    %48 = vector.load %arg1[%47, %c0_17] : memref<8x128xf32, #tpu.memory_space<vmem>>, vector<1x128xf32>
    %49 = vector.extract_strided_slice %45 {offsets = [0, 0], sizes = [32, 128], strides = [1, 1]} : vector<64x128xf32> to vector<32x128xf32>
    %50 = vector.broadcast %48 : vector<1x128xf32> to vector<32x128xf32>
    %51 = arith.mulf %3, %50 : vector<32x128xf32>
    %52 = arith.addf %49, %51 : vector<32x128xf32>
    %53 = arith.addf %52, %6 : vector<32x128xf32>
    %54 = math.tanh %53 : vector<32x128xf32>
    %55 = vector.extract_strided_slice %45 {offsets = [32, 0], sizes = [32, 128], strides = [1, 1]} : vector<64x128xf32> to vector<32x128xf32>
    %56 = arith.addf %55, %9 : vector<32x128xf32>
    %57 = math.tanh %56 : vector<32x128xf32>
    %58 = tpu.concatenate %54, %57 in 0 : vector<32x128xf32>, vector<32x128xf32> -> vector<64x128xf32>
    %c3_i32 = arith.constant 3 : i32
    %cst_18 = arith.constant dense<0.000000e+00> : vector<64x128xf32>
    %59 = tpu.matmul %0, %58, %cst_18 {dimension_numbers = #tpu.dot_dimension_numbers<[1], [0], [0], [1], [0, 0, 1, 1], [], []>} : vector<64x64xf32>, vector<64x128xf32>, vector<64x128xf32> -> vector<64x128xf32>
    %c1_i32_19 = arith.constant 1 : i32
    %60 = arith.addi %c3_i32, %c1_i32_19 : i32
    %61 = arith.index_cast %60 : i32 to index
    %c0_20 = arith.constant 0 : index
    %62 = vector.load %arg1[%61, %c0_20] : memref<8x128xf32, #tpu.memory_space<vmem>>, vector<1x128xf32>
    %63 = vector.extract_strided_slice %59 {offsets = [0, 0], sizes = [32, 128], strides = [1, 1]} : vector<64x128xf32> to vector<32x128xf32>
    %64 = vector.broadcast %62 : vector<1x128xf32> to vector<32x128xf32>
    %65 = arith.mulf %3, %64 : vector<32x128xf32>
    %66 = arith.addf %63, %65 : vector<32x128xf32>
    %67 = arith.addf %66, %6 : vector<32x128xf32>
    %68 = math.tanh %67 : vector<32x128xf32>
    %69 = vector.extract_strided_slice %59 {offsets = [32, 0], sizes = [32, 128], strides = [1, 1]} : vector<64x128xf32> to vector<32x128xf32>
    %70 = arith.addf %69, %9 : vector<32x128xf32>
    %71 = math.tanh %70 : vector<32x128xf32>
    %72 = tpu.concatenate %68, %71 in 0 : vector<32x128xf32>, vector<32x128xf32> -> vector<64x128xf32>
    %c4_i32 = arith.constant 4 : i32
    %cst_21 = arith.constant dense<0.000000e+00> : vector<64x128xf32>
    %73 = tpu.matmul %0, %72, %cst_21 {dimension_numbers = #tpu.dot_dimension_numbers<[1], [0], [0], [1], [0, 0, 1, 1], [], []>} : vector<64x64xf32>, vector<64x128xf32>, vector<64x128xf32> -> vector<64x128xf32>
    %c1_i32_22 = arith.constant 1 : i32
    %74 = arith.addi %c4_i32, %c1_i32_22 : i32
    %75 = arith.index_cast %74 : i32 to index
    %c0_23 = arith.constant 0 : index
    %76 = vector.load %arg1[%75, %c0_23] : memref<8x128xf32, #tpu.memory_space<vmem>>, vector<1x128xf32>
    %77 = vector.extract_strided_slice %73 {offsets = [0, 0], sizes = [32, 128], strides = [1, 1]} : vector<64x128xf32> to vector<32x128xf32>
    %78 = vector.broadcast %76 : vector<1x128xf32> to vector<32x128xf32>
    %79 = arith.mulf %3, %78 : vector<32x128xf32>
    %80 = arith.addf %77, %79 : vector<32x128xf32>
    %81 = arith.addf %80, %6 : vector<32x128xf32>
    %82 = math.tanh %81 : vector<32x128xf32>
    %83 = vector.extract_strided_slice %73 {offsets = [32, 0], sizes = [32, 128], strides = [1, 1]} : vector<64x128xf32> to vector<32x128xf32>
    %84 = arith.addf %83, %9 : vector<32x128xf32>
    %85 = math.tanh %84 : vector<32x128xf32>
    %86 = tpu.concatenate %82, %85 in 0 : vector<32x128xf32>, vector<32x128xf32> -> vector<64x128xf32>
    %c5_i32 = arith.constant 5 : i32
    %cst_24 = arith.constant dense<0.000000e+00> : vector<64x128xf32>
    %87 = tpu.matmul %0, %86, %cst_24 {dimension_numbers = #tpu.dot_dimension_numbers<[1], [0], [0], [1], [0, 0, 1, 1], [], []>} : vector<64x64xf32>, vector<64x128xf32>, vector<64x128xf32> -> vector<64x128xf32>
    %c1_i32_25 = arith.constant 1 : i32
    %88 = arith.addi %c5_i32, %c1_i32_25 : i32
    %89 = arith.index_cast %88 : i32 to index
    %c0_26 = arith.constant 0 : index
    %90 = vector.load %arg1[%89, %c0_26] : memref<8x128xf32, #tpu.memory_space<vmem>>, vector<1x128xf32>
    %91 = vector.extract_strided_slice %87 {offsets = [0, 0], sizes = [32, 128], strides = [1, 1]} : vector<64x128xf32> to vector<32x128xf32>
    %92 = vector.broadcast %90 : vector<1x128xf32> to vector<32x128xf32>
    %93 = arith.mulf %3, %92 : vector<32x128xf32>
    %94 = arith.addf %91, %93 : vector<32x128xf32>
    %95 = arith.addf %94, %6 : vector<32x128xf32>
    %96 = math.tanh %95 : vector<32x128xf32>
    %97 = vector.extract_strided_slice %87 {offsets = [32, 0], sizes = [32, 128], strides = [1, 1]} : vector<64x128xf32> to vector<32x128xf32>
    %98 = arith.addf %97, %9 : vector<32x128xf32>
    %99 = math.tanh %98 : vector<32x128xf32>
    %100 = tpu.concatenate %96, %99 in 0 : vector<32x128xf32>, vector<32x128xf32> -> vector<64x128xf32>
    %c6_i32 = arith.constant 6 : i32
    %cst_27 = arith.constant dense<0.000000e+00> : vector<64x128xf32>
    %101 = tpu.matmul %0, %100, %cst_27 {dimension_numbers = #tpu.dot_dimension_numbers<[1], [0], [0], [1], [0, 0, 1, 1], [], []>} : vector<64x64xf32>, vector<64x128xf32>, vector<64x128xf32> -> vector<64x128xf32>
    %c1_i32_28 = arith.constant 1 : i32
    %102 = arith.addi %c6_i32, %c1_i32_28 : i32
    %103 = arith.index_cast %102 : i32 to index
    %c0_29 = arith.constant 0 : index
    %104 = vector.load %arg1[%103, %c0_29] : memref<8x128xf32, #tpu.memory_space<vmem>>, vector<1x128xf32>
    %105 = vector.extract_strided_slice %101 {offsets = [0, 0], sizes = [32, 128], strides = [1, 1]} : vector<64x128xf32> to vector<32x128xf32>
    %106 = vector.broadcast %104 : vector<1x128xf32> to vector<32x128xf32>
    %107 = arith.mulf %3, %106 : vector<32x128xf32>
    %108 = arith.addf %105, %107 : vector<32x128xf32>
    %109 = arith.addf %108, %6 : vector<32x128xf32>
    %110 = math.tanh %109 : vector<32x128xf32>
    %111 = vector.extract_strided_slice %101 {offsets = [32, 0], sizes = [32, 128], strides = [1, 1]} : vector<64x128xf32> to vector<32x128xf32>
    %112 = arith.addf %111, %9 : vector<32x128xf32>
    %113 = math.tanh %112 : vector<32x128xf32>
    %114 = tpu.concatenate %110, %113 in 0 : vector<32x128xf32>, vector<32x128xf32> -> vector<64x128xf32>
    %c7_i32 = arith.constant 7 : i32
    %115 = vector.extract_strided_slice %0 {offsets = [32, 0], sizes = [32, 64], strides = [1, 1]} : vector<64x64xf32> to vector<32x64xf32>
    %cst_30 = arith.constant dense<0.000000e+00> : vector<32x128xf32>
    %116 = tpu.matmul %115, %114, %cst_30 {dimension_numbers = #tpu.dot_dimension_numbers<[1], [0], [0], [1], [0, 0, 1, 1], [], []>} : vector<32x64xf32>, vector<64x128xf32>, vector<32x128xf32> -> vector<32x128xf32>
    %117 = arith.addf %116, %9 : vector<32x128xf32>
    %118 = math.tanh %117 : vector<32x128xf32>
    %c0_31 = arith.constant 0 : index
    %c0_32 = arith.constant 0 : index
    %119 = vector.load %arg6[%c0_31, %c0_32] : memref<1x32xf32, #tpu.memory_space<vmem>>, vector<1x32xf32>
    %cst_33 = arith.constant dense<0.000000e+00> : vector<1x128xf32>
    %120 = tpu.matmul %119, %118, %cst_33 {dimension_numbers = #tpu.dot_dimension_numbers<[1], [0], [0], [1], [0, 0, 1, 1], [], []>} : vector<1x32xf32>, vector<32x128xf32>, vector<1x128xf32> -> vector<1x128xf32>
    %c0_34 = arith.constant 0 : index
    %c0_35 = arith.constant 0 : index
    %121 = memref.load %arg7[%c0_34, %c0_35] : memref<1x1xf32, #tpu.memory_space<smem>>
    %122 = vector.broadcast %121 : f32 to vector<1x128xf32>
    %123 = arith.addf %120, %122 : vector<1x128xf32>
    %c0_36 = arith.constant 0 : index
    %c0_37 = arith.constant 0 : index
    %124 = vector.load %arg8[%c0_36, %c0_37] : memref<1x128xf32, #tpu.memory_space<vmem>>, vector<1x128xf32>
    tpu.vector_store %arg8[%c0_36, %c0_37], %123 {strides = array<i32>} : memref<1x128xf32, #tpu.memory_space<vmem>>, vector<1x128xf32>,
    return
  }
  func.func @transform_0(%arg0: i32) -> (i32, i32) {
    %c0_i32 = arith.constant 0 : i32
    %c0_i32_0 = arith.constant 0 : i32
    return %c0_i32, %arg0 : i32, i32
  }
  func.func @transform_1(%arg0: i32) -> (i32, i32) {
    %c0_i32 = arith.constant 0 : i32
    %c0_i32_0 = arith.constant 0 : i32
    %c0_i32_1 = arith.constant 0 : i32
    return %c0_i32, %c0_i32_0 : i32, i32
  }
  func.func @transform_2(%arg0: i32) -> (i32, i32) {
    %c0_i32 = arith.constant 0 : i32
    %c0_i32_0 = arith.constant 0 : i32
    %c0_i32_1 = arith.constant 0 : i32
    return %c0_i32, %c0_i32_0 : i32, i32
  }
  func.func @transform_3(%arg0: i32) -> (i32, i32) {
    %c0_i32 = arith.constant 0 : i32
    %c0_i32_0 = arith.constant 0 : i32
    %c0_i32_1 = arith.constant 0 : i32
    return %c0_i32, %c0_i32_0 : i32, i32
  }
  func.func @transform_4(%arg0: i32) -> (i32, i32) {
    %c0_i32 = arith.constant 0 : i32
    %c0_i32_0 = arith.constant 0 : i32
    %c0_i32_1 = arith.constant 0 : i32
    return %c0_i32, %c0_i32_0 : i32, i32
  }
  func.func @transform_5(%arg0: i32) -> (i32, i32) {
    %c0_i32 = arith.constant 0 : i32
    %c0_i32_0 = arith.constant 0 : i32
    %c0_i32_1 = arith.constant 0 : i32
    return %c0_i32, %c0_i32_0 : i32, i32
  }
  func.func @transform_6(%arg0: i32) -> (i32, i32) {
    %c0_i32 = arith.constant 0 : i32
    %c0_i32_0 = arith.constant 0 : i32
    %c0_i32_1 = arith.constant 0 : i32
    return %c0_i32, %c0_i32_0 : i32, i32
  }
  func.func @transform_7(%arg0: i32) -> (i32, i32) {
    %c0_i32 = arith.constant 0 : i32
    %c0_i32_0 = arith.constant 0 : i32
    return %c0_i32, %arg0 : i32, i32
  }
}

</mosaic_0001>

<bundles_post_ra>
// kernel: tpu_custom_call.1
= control target key start
LH: loop header
LB: loop body
LE: loop exit
PB: predicated region body
PF: predicated region fallthrough
CT: control target
= control target key end

     0   :  { %v1969_v2 = vmov 0   ;;  %s2372_s0 = inlined_call_operand.vmem [shape: f32[8,128], index: 0, kind: input, shape index: {}]   ;;  %s2373_s1 = inlined_call_operand.vmem [shape: f32[32,1], index: 1, kind: input, shape index: {}]   ;;  %s2374_s2 = inlined_call_operand.vmem [shape: f32[32,1], index: 2, kind: input, shape index: {}]   ;;  %s2375_s3 = inlined_call_operand.vmem [shape: f32[64,64], index: 3, kind: input, shape index: {}]   ;;  %s2376_s4 = inlined_call_operand.vmem [shape: f32[32,1], index: 4, kind: input, shape index: {}]   ;;  %s2377_s5 = inlined_call_operand.vmem [shape: f32[1,32], index: 5, kind: input, shape index: {}]   ;;  %s2378_s6 = inlined_call_operand.<no memory space> [shape: f32[1,1], index: 6, kind: input, shape index: {}]   ;;  %s2379_s7 = inlined_call_operand.hbm [shape: f32[1,128], index: 7, kind: output, shape index: {}]  }
   0x1   :  { %v60_v0 = vld [vmem:[%s2374_s2] sm:$0xff]  ;;  %1816 = vset.pattern.permute.xlu1 %v1969_v2  ;;  %1815 = vset.pattern.permute.xlu0 %v1969_v2  ;;  %v61_v3 = vld [vmem:[%s2374_s2 + $0x8] sm:$0xff] }
   0x2   :  { %v36_v1 = vld [vmem:[%s2373_s1] sm:$0xff]  ;;  %66 = vperm.xlu1 %1816, %v60_v0   ;;  %v37_v4 = vld [vmem:[%s2373_s1 + $0x8] sm:$0xff] }
   0x3   :  { %42 = vperm.xlu0 %1815, %v36_v1  }
   0x6   :  { %71 = vperm.xlu1 %1816, %v61_v3  }
   0x7   :  { %47 = vperm.xlu0 %1815, %v37_v4  }
   0x8   :  { %13 = vsyncpa [#allocation4], 0  ;;  %v39_v5 = vld [vmem:[%s2373_s1 + $0x18] sm:$0xff]  ;;  %v38_v6 = vld [vmem:[%s2373_s1 + $0x10] sm:$0xff]  ;;  %vm125_vm0 = vcmask 523264   ;;  %vm1971_vm1 = vmmov 0  }
   0x9   :  { %v63_v7 = vld [vmem:[%s2374_s2 + $0x18] sm:$0xff]  ;;  %v62_v8 = vld [vmem:[%s2374_s2 + $0x10] sm:$0xff]  ;;  %v85_v9 = vld [vmem:[%s2376_s4 + $0x8] sm:$0xff]  ;;  %vm1180_vm2 = vcmask 261120   ;;  %s1973_s30 = smov [#allocation3]  }
   0xa   :  { %57 = vperm.xlu1 %1816, %v39_v5   ;;  %v84_v10 = vld [vmem:[%s2376_s4] sm:$0xff]  ;;  %v87_v11 = vld [vmem:[%s2376_s4 + $0x18] sm:$0xff]  ;;  %v86_v12 = vld [vmem:[%s2376_s4 + $0x10] sm:$0xff]  ;;  %s1261_s8 = sshll.u32 %s1973_s30, 4  ;;  %s1262_s8 = int_to_ptr.vmem [resolvable:$true] %s1261_s8 }
   0xb   :  { %52 = vperm.xlu0 %1815, %v38_v6   ;;  %v2053_v13 = vld [vmem:[%s2375_s3] sm:$0xff]  ;;  %v2089_v37 = vld [vmem:[%s2375_s3 + $0x8] sm:$0xff]  ;;  %v2094_v38 = vld [vmem:[%s2375_s3 + $0x10] sm:$0xff]  ;;  %s1945_s9 = scalar_lea.vmem %s1262_s8, 16  ;;  %s1949_s10 = scalar_lea.vmem %s1262_s8, 32 }
   0xc   :  { %1471 = vmatprep.mubr.msk.f32.mxu0 %vm125_vm0, %v2053_v13  ;;  %1499 = vmatprep.mubr.msk.f32.mxu1 %vm125_vm0, %v2053_v13  ;;  %v1269_v14 = vld [vmem:[%s2372_s0] ss:$0 sm:$0xff]  ;;  %v2103_v39 = vld [vmem:[%s2375_s3 + $0x18] sm:$0xff]  ;;  %v2117_v41 = vld [vmem:[%s2375_s3 + $0x28] sm:$0xff]  ;;  %p1946_p0 = scmp.ne.s32.totalorder %s1262_s8, %s1945_s9  ;;  %p1950_p1 = scmp.lt.s32.totalorder %s1262_s8, %s1262_s8 }
   0xd   :  { %v2108_v40 = vld [vmem:[%s2375_s3 + $0x20] sm:$0xff]  ;;  %v2122_v42 = vld [vmem:[%s2375_s3 + $0x30] sm:$0xff]  ;;  %v2131_v43 = vld [vmem:[%s2375_s3 + $0x38] sm:$0xff]  ;;  %p1951_p2 = scmp.lt.s32.totalorder %s1949_s10, %s1945_s9 }
   0xe   :  { %81 = vperm.xlu1 %1816, %v63_v7   ;;  %v1278_v44 = vld [vmem:[%s2372_s0 + $0x1] ss:$0 sm:$0xff] }
   0xf   :  { %76 = vperm.xlu0 %1815, %v62_v8   ;;  %p1952_p3 = por %p1951_p2, %p1950_p1 }
  0x11   :  { %p1953_p4 = pnand %p1952_p3, %p1946_p0 }
  0x12   :  { %95 = vperm.xlu1 %1816, %v85_v9  }
  0x13   :  { %90 = vperm.xlu0 %1815, %v84_v10  }
  0x16   :  { %105 = vperm.xlu1 %1816, %v87_v11  }
  0x17   :  { %100 = vperm.xlu0 %1815, %v86_v12  }
  0x81   :  { %v2062_v15 = vpop.permute.xlu1 %66 }
  0x82   :  { %v2064_v16 = vpop.permute.xlu0 %42 }
  0x83   :  { %v113_v17 = vmul.f32 %v1269_v14, %v2064_v16  ;;  %v260_v47 = vmul.f32 %v1278_v44, %v2064_v16 }
  0x85   :  { %v2067_v18 = vpop.permute.xlu1 %71  ;;  %v117_v20 = vadd.f32 %v113_v17, %v2062_v15 }
  0x86   :  { %v2069_v19 = vpop.permute.xlu0 %47 }
  0x87   :  { %v114_v21 = vmul.f32 %v1269_v14, %v2069_v19  ;;  %1817 = vtanh.f32 %v117_v20  ;;  %v261_v45 = vmul.f32 %v1278_v44, %v2069_v19 }
  0x89   :  { %v118_v22 = vadd.f32 %v114_v21, %v2067_v18  ;;  %v2074_v23 = vpop.permute.xlu1 %57 }
  0x8a   :  { %v2076_v24 = vpop.permute.xlu0 %52  ;;  %v116_v26 = vmul.f32 %v1269_v14, %v2074_v23  ;;  %v263_v52 = vmul.f32 %v1278_v44, %v2074_v23 }
  0x8b   :  { %1819 = vtanh.f32 %v118_v22  ;;  %v115_v25 = vmul.f32 %v1269_v14, %v2076_v24  ;;  %v262_v55 = vmul.f32 %v1278_v44, %v2076_v24 }
  0x8d   :  { %v2080_v27 = vpop.permute.xlu1 %81 }
  0x8e   :  { %v2082_v28 = vpop.permute.xlu0 %76  ;;  %v120_v30 = vadd.f32 %v116_v26, %v2080_v27 }
  0x8f   :  { %v119_v29 = vadd.f32 %v115_v25, %v2082_v28 }
  0x91   :  { %1821 = vtanh.f32 %v119_v29  ;;  %v1818_v31 = vpop.eup %1817  ;;  %v2146_v58 = vpop.permute.xlu1 %95 }
  0x92   :  { %1823 = vtanh.f32 %v120_v30  ;;  %v2148_v60 = vpop.permute.xlu0 %90  ;;  %v1287_v30 = vld [vmem:[%s2372_s0 + $0x2] ss:$0 sm:$0xff] }
  0x95   :  { %v1820_v32 = vpop.eup %1819  ;;  %v2154_v3 = vpop.permute.xlu1 %105 }
  0x96   :  { %v1684_v33 = vpack.c.bf16 %v1820_v32, %v1818_v31  ;;  %v2156_v5 = vpop.permute.xlu0 %100  ;;  %v395_v31 = vmul.f32 %v1287_v30, %v2069_v19 }
  0x98   :  { %1685 = vmatprep.subr.bf16.mxu0 %v1684_v33 }
  0x99   :  { %1687 = vmatpush3.bf16.msra.mxu0 %v1684_v33  ;;  %v394_v33 = vmul.f32 %v1287_v30, %v2064_v16 }
  0x9b   :  { %v1822_v34 = vpop.eup %1821 }
  0x9c   :  { %v1824_v35 = vpop.eup %1823 }
  0x9d   :  { %v1688_v36 = vpack.c.bf16 %v1824_v35, %v1822_v34 }
  0x9f   :  { %1689 = vmatprep.subr.bf16.mxu0 %v1688_v36 }
  0xa0   :  { %1691 = vmatpush3.bf16.msra.mxu0 %v1688_v36 }
  0xa3   :  { %1472 = vmatmul.mubr.msk.f32.vlgmr.msra.gmra.mrb[0].mxu0 %vm125_vm0, %v2089_v37 }
  0xa4   :  { %1474 = vmatprep.mubr.msk.f32.mxu0 %vm125_vm0, %v2094_v38 }
  0xa7   :  { %1475 = vmatmul.mubr.msk.f32.gmra.mrb[2].mxu0 %vm125_vm0, %v2103_v39 }
  0xa8   :  { %1477 = vmatprep.mubr.msk.f32.mxu0 %vm125_vm0, %v2108_v40 }
  0xab   :  { %1478 = vmatmul.mubr.msk.f32.gmra.mrb[4].mxu0 %vm125_vm0, %v2117_v41 }
  0xac   :  { %1480 = vmatprep.mubr.msk.f32.mxu0 %vm125_vm0, %v2122_v42 }
  0xaf   :  { %1481 = vmatmul.mubr.msk.f32.gmra.mrb[6].mxu0 %vm125_vm0, %v2131_v43 }
  0xb0   :  { %1527 = vmatprep.mubr.msk.f32.mxu0 %vm125_vm0, %v2053_v13 }
 0x176   :  { %v1473_v46 = vpop.f32.mrb[0].mxu0 }
 0x177   :  { %v265_v48 = vadd.f32 %v1473_v46, %v261_v45  ;;  %v216_v49 = vpop.f32.mrb[1].mxu0  ;;  %v397_v45 = vmul.f32 %v1287_v30, %v2074_v23 }
 0x178   :  { %v264_v50 = vadd.f32 %v260_v47, %v216_v49 }
 0x179   :  { %v269_v51 = vadd.f32 %v265_v48, %v2067_v18  ;;  %v396_v48 = vmul.f32 %v1287_v30, %v2076_v24 }
 0x17a   :  { %v268_v53 = vadd.f32 %v264_v50, %v2062_v15  ;;  %v1476_v54 = vpop.f32.mrb[2].mxu0 }
 0x17b   :  { %1825 = vtanh.f32 %v269_v51  ;;  %v267_v56 = vadd.f32 %v1476_v54, %v263_v52  ;;  %v226_v57 = vpop.f32.mrb[3].mxu0 }
 0x17c   :  { %1827 = vtanh.f32 %v268_v53  ;;  %v266_v59 = vadd.f32 %v262_v55, %v226_v57 }
 0x17d   :  { %v271_v61 = vadd.f32 %v267_v56, %v2080_v27 }
 0x17e   :  { %v270_v62 = vadd.f32 %v266_v59, %v2082_v28  ;;  %v1479_v63 = vpop.f32.mrb[4].mxu0 }
 0x17f   :  { %1829 = vtanh.f32 %v271_v61  ;;  %v277_v0 = vadd.f32 %v1479_v63, %v2146_v58  ;;  %v236_v1 = vpop.f32.mrb[5].mxu0 }
 0x180   :  { %1831 = vtanh.f32 %v270_v62  ;;  %v276_v2 = vadd.f32 %v236_v1, %v2148_v60 }
 0x181   :  { %1833 = vtanh.f32 %v277_v0 }
 0x182   :  { %1835 = vtanh.f32 %v276_v2  ;;  %v1482_v4 = vpop.f32.mrb[6].mxu0 }
 0x183   :  { %v279_v6 = vadd.f32 %v1482_v4, %v2154_v3  ;;  %v246_v7 = vpop.f32.mrb[7].mxu0 }
 0x184   :  { %v278_v8 = vadd.f32 %v246_v7, %v2156_v5 }
 0x185   :  { %v1826_v9 = vpop.eup %1825  ;;  %1837 = vtanh.f32 %v279_v6 }
 0x186   :  { %v1828_v10 = vpop.eup %1827  ;;  %1839 = vtanh.f32 %v278_v8 }
 0x187   :  { %v1692_v11 = vpack.c.bf16 %v1826_v9, %v1828_v10 }
 0x189   :  { %v1830_v12 = vpop.eup %1829  ;;  %1693 = vmatprep.subr.bf16.mxu1 %v1692_v11 }
 0x18a   :  { %v1832_v14 = vpop.eup %1831  ;;  %1695 = vmatpush3.bf16.msra.mxu1 %v1692_v11 }
 0x18b   :  { %v1834_v17 = vpop.eup %1833  ;;  %v1696_v20 = vpack.c.bf16 %v1830_v12, %v1832_v14 }
 0x18c   :  { %v1836_v21 = vpop.eup %1835 }
 0x18d   :  { %1697 = vmatprep.subr.bf16.mxu1 %v1696_v20  ;;  %v1700_v22 = vpack.c.bf16 %v1834_v17, %v1836_v21  ;;  %v1296_v17 = vld [vmem:[%s2372_s0 + $0x3] ss:$0 sm:$0xff] }
 0x18e   :  { %1699 = vmatpush3.bf16.msra.mxu1 %v1696_v20  ;;  %v529_v20 = vmul.f32 %v1296_v17, %v2069_v19 }
 0x18f   :  { %v1838_v25 = vpop.eup %1837  ;;  %1701 = vmatprep.subr.bf16.mxu1 %v1700_v22 }
 0x190   :  { %v1840_v26 = vpop.eup %1839 }
 0x191   :  { %v1704_v29 = vpack.c.bf16 %v1838_v25, %v1840_v26 }
 0x192   :  { %1703 = vmatpush3.bf16.msra.mxu1 %v1700_v22  ;;  %v528_v22 = vmul.f32 %v1296_v17, %v2064_v16 }
 0x193   :  { %1705 = vmatprep.subr.bf16.mxu1 %v1704_v29 }
 0x196   :  { %1707 = vmatpush3.bf16.msra.mxu1 %v1704_v29 }
 0x199   :  { %1500 = vmatmul.mubr.msk.f32.vlgmr.msra.gmra.mrb[0].mxu1 %vm125_vm0, %v2089_v37 }
 0x19a   :  { %1502 = vmatprep.mubr.msk.f32.mxu1 %vm125_vm0, %v2094_v38 }
 0x19d   :  { %1503 = vmatmul.mubr.msk.f32.gmra.mrb[2].mxu1 %vm125_vm0, %v2103_v39 }
 0x19e   :  { %1505 = vmatprep.mubr.msk.f32.mxu1 %vm125_vm0, %v2108_v40 }
 0x1a1   :  { %1506 = vmatmul.mubr.msk.f32.gmra.mrb[4].mxu1 %vm125_vm0, %v2117_v41 }
 0x1a2   :  { %1508 = vmatprep.mubr.msk.f32.mxu1 %vm125_vm0, %v2122_v42 }
 0x1a5   :  { %1509 = vmatmul.mubr.msk.f32.gmra.mrb[6].mxu1 %vm125_vm0, %v2131_v43 }
 0x1a6   :  { %1555 = vmatprep.mubr.msk.f32.mxu1 %vm125_vm0, %v2053_v13 }
 0x26c   :  { %v1501_v32 = vpop.f32.mrb[0].mxu1 }
 0x26d   :  { %v399_v34 = vadd.f32 %v1501_v32, %v395_v31  ;;  %v350_v35 = vpop.f32.mrb[1].mxu1  ;;  %v531_v31 = vmul.f32 %v1296_v17, %v2074_v23 }
 0x26e   :  { %v398_v36 = vadd.f32 %v394_v33, %v350_v35 }
 0x26f   :  { %v403_v44 = vadd.f32 %v399_v34, %v2067_v18  ;;  %v530_v34 = vmul.f32 %v1296_v17, %v2076_v24 }
 0x270   :  { %v402_v46 = vadd.f32 %v398_v36, %v2062_v15  ;;  %v1504_v47 = vpop.f32.mrb[2].mxu1 }
 0x271   :  { %1841 = vtanh.f32 %v403_v44  ;;  %v401_v49 = vadd.f32 %v1504_v47, %v397_v45  ;;  %v360_v50 = vpop.f32.mrb[3].mxu1 }
 0x272   :  { %1843 = vtanh.f32 %v402_v46  ;;  %v400_v51 = vadd.f32 %v396_v48, %v360_v50 }
 0x273   :  { %v405_v52 = vadd.f32 %v401_v49, %v2080_v27 }
 0x274   :  { %v404_v53 = vadd.f32 %v400_v51, %v2082_v28  ;;  %v1507_v54 = vpop.f32.mrb[4].mxu1 }
 0x275   :  { %1845 = vtanh.f32 %v405_v52  ;;  %v411_v55 = vadd.f32 %v1507_v54, %v2146_v58  ;;  %v370_v56 = vpop.f32.mrb[5].mxu1 }
 0x276   :  { %1847 = vtanh.f32 %v404_v53  ;;  %v410_v57 = vadd.f32 %v370_v56, %v2148_v60 }
 0x277   :  { %1849 = vtanh.f32 %v411_v55 }
 0x278   :  { %1851 = vtanh.f32 %v410_v57  ;;  %v1510_v59 = vpop.f32.mrb[6].mxu1 }
 0x279   :  { %v413_v61 = vadd.f32 %v1510_v59, %v2154_v3  ;;  %v380_v62 = vpop.f32.mrb[7].mxu1 }
 0x27a   :  { %v412_v63 = vadd.f32 %v380_v62, %v2156_v5 }
 0x27b   :  { %v1842_v0 = vpop.eup %1841  ;;  %1853 = vtanh.f32 %v413_v61 }
 0x27c   :  { %v1844_v1 = vpop.eup %1843  ;;  %1855 = vtanh.f32 %v412_v63 }
 0x27d   :  { %v1708_v2 = vpack.c.bf16 %v1842_v0, %v1844_v1 }
 0x27f   :  { %v1846_v4 = vpop.eup %1845  ;;  %1709 = vmatprep.subr.bf16.mxu0 %v1708_v2 }
 0x280   :  { %v1848_v6 = vpop.eup %1847  ;;  %1711 = vmatpush3.bf16.msra.mxu0 %v1708_v2 }
 0x281   :  { %v1850_v7 = vpop.eup %1849  ;;  %v1712_v8 = vpack.c.bf16 %v1846_v4, %v1848_v6 }
 0x282   :  { %v1852_v9 = vpop.eup %1851 }
 0x283   :  { %1713 = vmatprep.subr.bf16.mxu0 %v1712_v8  ;;  %v1716_v10 = vpack.c.bf16 %v1850_v7, %v1852_v9  ;;  %v1305_v7 = vld [vmem:[%s2372_s0 + $0x4] ss:$0 sm:$0xff] }
 0x284   :  { %1715 = vmatpush3.bf16.msra.mxu0 %v1712_v8  ;;  %v663_v8 = vmul.f32 %v1305_v7, %v2069_v19 }
 0x285   :  { %v1854_v11 = vpop.eup %1853  ;;  %1717 = vmatprep.subr.bf16.mxu0 %v1716_v10 }
 0x286   :  { %v1856_v12 = vpop.eup %1855 }
 0x287   :  { %v1720_v14 = vpack.c.bf16 %v1854_v11, %v1856_v12 }
 0x288   :  { %1719 = vmatpush3.bf16.msra.mxu0 %v1716_v10  ;;  %v662_v10 = vmul.f32 %v1305_v7, %v2064_v16 }
 0x289   :  { %1721 = vmatprep.subr.bf16.mxu0 %v1720_v14 }
 0x28c   :  { %1723 = vmatpush3.bf16.msra.mxu0 %v1720_v14 }
 0x28f   :  { %1528 = vmatmul.mubr.msk.f32.vlgmr.msra.gmra.mrb[8].mxu0 %vm125_vm0, %v2089_v37 }
 0x290   :  { %1530 = vmatprep.mubr.msk.f32.mxu0 %vm125_vm0, %v2094_v38 }
 0x293   :  { %1531 = vmatmul.mubr.msk.f32.gmra.mrb[10].mxu0 %vm125_vm0, %v2103_v39 }
 0x294   :  { %1533 = vmatprep.mubr.msk.f32.mxu0 %vm125_vm0, %v2108_v40 }
 0x297   :  { %1534 = vmatmul.mubr.msk.f32.gmra.mrb[12].mxu0 %vm125_vm0, %v2117_v41 }
 0x298   :  { %1536 = vmatprep.mubr.msk.f32.mxu0 %vm125_vm0, %v2122_v42 }
 0x29b   :  { %1537 = vmatmul.mubr.msk.f32.gmra.mrb[14].mxu0 %vm125_vm0, %v2131_v43 }
 0x29c   :  { %1583 = vmatprep.mubr.msk.f32.mxu0 %vm125_vm0, %v2053_v13 }
 0x362   :  { %v1529_v21 = vpop.f32.mrb[8].mxu0 }
 0x363   :  { %v533_v25 = vadd.f32 %v1529_v21, %v529_v20  ;;  %v484_v26 = vpop.f32.mrb[9].mxu0  ;;  %v665_v20 = vmul.f32 %v1305_v7, %v2074_v23 }
 0x364   :  { %v532_v29 = vadd.f32 %v528_v22, %v484_v26 }
 0x365   :  { %v537_v30 = vadd.f32 %v533_v25, %v2067_v18  ;;  %v664_v25 = vmul.f32 %v1305_v7, %v2076_v24 }
 0x366   :  { %v536_v32 = vadd.f32 %v532_v29, %v2062_v15  ;;  %v1532_v33 = vpop.f32.mrb[10].mxu0 }
 0x367   :  { %1857 = vtanh.f32 %v537_v30  ;;  %v535_v35 = vadd.f32 %v1532_v33, %v531_v31  ;;  %v494_v36 = vpop.f32.mrb[11].mxu0 }
 0x368   :  { %1859 = vtanh.f32 %v536_v32  ;;  %v534_v44 = vadd.f32 %v530_v34, %v494_v36 }
 0x369   :  { %v539_v45 = vadd.f32 %v535_v35, %v2080_v27 }
 0x36a   :  { %v538_v46 = vadd.f32 %v534_v44, %v2082_v28  ;;  %v1535_v47 = vpop.f32.mrb[12].mxu0 }
 0x36b   :  { %1861 = vtanh.f32 %v539_v45  ;;  %v545_v48 = vadd.f32 %v1535_v47, %v2146_v58  ;;  %v504_v49 = vpop.f32.mrb[13].mxu0 }
 0x36c   :  { %1863 = vtanh.f32 %v538_v46  ;;  %v544_v50 = vadd.f32 %v504_v49, %v2148_v60 }
 0x36d   :  { %1865 = vtanh.f32 %v545_v48 }
 0x36e   :  { %1867 = vtanh.f32 %v544_v50  ;;  %v1538_v51 = vpop.f32.mrb[14].mxu0 }
 0x36f   :  { %v547_v52 = vadd.f32 %v1538_v51, %v2154_v3  ;;  %v514_v53 = vpop.f32.mrb[15].mxu0 }
 0x370   :  { %v546_v54 = vadd.f32 %v514_v53, %v2156_v5 }
 0x371   :  { %v1858_v55 = vpop.eup %1857  ;;  %1869 = vtanh.f32 %v547_v52 }
 0x372   :  { %v1860_v56 = vpop.eup %1859  ;;  %1871 = vtanh.f32 %v546_v54 }
 0x373   :  { %v1724_v57 = vpack.c.bf16 %v1858_v55, %v1860_v56 }
 0x375   :  { %v1862_v59 = vpop.eup %1861  ;;  %1725 = vmatprep.subr.bf16.mxu1 %v1724_v57 }
 0x376   :  { %v1864_v61 = vpop.eup %1863  ;;  %1727 = vmatpush3.bf16.msra.mxu1 %v1724_v57 }
 0x377   :  { %v1866_v62 = vpop.eup %1865  ;;  %v1728_v63 = vpack.c.bf16 %v1862_v59, %v1864_v61 }
 0x378   :  { %v1868_v0 = vpop.eup %1867 }
 0x379   :  { %1729 = vmatprep.subr.bf16.mxu1 %v1728_v63  ;;  %v1732_v1 = vpack.c.bf16 %v1866_v62, %v1868_v0  ;;  %v1314_v62 = vld [vmem:[%s2372_s0 + $0x5] ss:$0 sm:$0xff] }
 0x37a   :  { %1731 = vmatpush3.bf16.msra.mxu1 %v1728_v63  ;;  %v797_v63 = vmul.f32 %v1314_v62, %v2069_v19 }
 0x37b   :  { %v1870_v2 = vpop.eup %1869  ;;  %1733 = vmatprep.subr.bf16.mxu1 %v1732_v1 }
 0x37c   :  { %v1872_v4 = vpop.eup %1871 }
 0x37d   :  { %v1736_v6 = vpack.c.bf16 %v1870_v2, %v1872_v4 }
 0x37e   :  { %1735 = vmatpush3.bf16.msra.mxu1 %v1732_v1  ;;  %v796_v1 = vmul.f32 %v1314_v62, %v2064_v16 }
 0x37f   :  { %1737 = vmatprep.subr.bf16.mxu1 %v1736_v6 }
 0x382   :  { %1739 = vmatpush3.bf16.msra.mxu1 %v1736_v6 }
 0x385   :  { %1556 = vmatmul.mubr.msk.f32.vlgmr.msra.gmra.mrb[8].mxu1 %vm125_vm0, %v2089_v37 }
 0x386   :  { %1558 = vmatprep.mubr.msk.f32.mxu1 %vm125_vm0, %v2094_v38 }
 0x389   :  { %1559 = vmatmul.mubr.msk.f32.gmra.mrb[10].mxu1 %vm125_vm0, %v2103_v39 }
 0x38a   :  { %1561 = vmatprep.mubr.msk.f32.mxu1 %vm125_vm0, %v2108_v40 }
 0x38d   :  { %1562 = vmatmul.mubr.msk.f32.gmra.mrb[12].mxu1 %vm125_vm0, %v2117_v41 }
 0x38e   :  { %1564 = vmatprep.mubr.msk.f32.mxu1 %vm125_vm0, %v2122_v42 }
 0x391   :  { %1565 = vmatmul.mubr.msk.f32.gmra.mrb[14].mxu1 %vm125_vm0, %v2131_v43 }
 0x392   :  { %1611 = vmatprep.mubr.msk.f32.mxu1 %vm125_vm0, %v2053_v13 }
 0x458   :  { %v1557_v9 = vpop.f32.mrb[8].mxu1 }
 0x459   :  { %v667_v11 = vadd.f32 %v1557_v9, %v663_v8  ;;  %v618_v12 = vpop.f32.mrb[9].mxu1  ;;  %v799_v8 = vmul.f32 %v1314_v62, %v2074_v23 }
 0x45a   :  { %v666_v14 = vadd.f32 %v662_v10, %v618_v12 }
 0x45b   :  { %v671_v17 = vadd.f32 %v667_v11, %v2067_v18 }
 0x45c   :  { %v670_v21 = vadd.f32 %v666_v14, %v2062_v15  ;;  %v1560_v22 = vpop.f32.mrb[10].mxu1 }
 0x45d   :  { %1873 = vtanh.f32 %v671_v17  ;;  %v669_v26 = vadd.f32 %v1560_v22, %v665_v20  ;;  %v628_v29 = vpop.f32.mrb[11].mxu1 }
 0x45e   :  { %1875 = vtanh.f32 %v670_v21  ;;  %v668_v30 = vadd.f32 %v664_v25, %v628_v29 }
 0x45f   :  { %v673_v31 = vadd.f32 %v669_v26, %v2080_v27 }
 0x460   :  { %v672_v32 = vadd.f32 %v668_v30, %v2082_v28  ;;  %v1563_v33 = vpop.f32.mrb[12].mxu1 }
 0x461   :  { %1877 = vtanh.f32 %v673_v31  ;;  %v679_v34 = vadd.f32 %v1563_v33, %v2146_v58  ;;  %v638_v35 = vpop.f32.mrb[13].mxu1 }
 0x462   :  { %1879 = vtanh.f32 %v672_v32  ;;  %v678_v36 = vadd.f32 %v638_v35, %v2148_v60 }
 0x463   :  { %1881 = vtanh.f32 %v679_v34 }
 0x464   :  { %1883 = vtanh.f32 %v678_v36  ;;  %v1566_v44 = vpop.f32.mrb[14].mxu1 }
 0x465   :  { %v681_v45 = vadd.f32 %v1566_v44, %v2154_v3  ;;  %v648_v46 = vpop.f32.mrb[15].mxu1 }
 0x466   :  { %v680_v47 = vadd.f32 %v648_v46, %v2156_v5 }
 0x467   :  { %v1874_v48 = vpop.eup %1873  ;;  %1885 = vtanh.f32 %v681_v45 }
 0x468   :  { %v1876_v49 = vpop.eup %1875  ;;  %1887 = vtanh.f32 %v680_v47 }
 0x469   :  { %v1740_v50 = vpack.c.bf16 %v1874_v48, %v1876_v49 }
 0x46b   :  { %v1878_v51 = vpop.eup %1877  ;;  %1741 = vmatprep.subr.bf16.mxu0 %v1740_v50 }
 0x46c   :  { %v1880_v52 = vpop.eup %1879  ;;  %1743 = vmatpush3.bf16.msra.mxu0 %v1740_v50 }
 0x46d   :  { %v1882_v53 = vpop.eup %1881  ;;  %v1744_v54 = vpack.c.bf16 %v1878_v51, %v1880_v52  ;;  %v1323_v52 = vld [vmem:[%s2372_s0 + $0x6] ss:$0 sm:$0xff] }
 0x46e   :  { %v1884_v55 = vpop.eup %1883 }
 0x46f   :  { %1745 = vmatprep.subr.bf16.mxu0 %v1744_v54  ;;  %v1748_v56 = vpack.c.bf16 %v1882_v53, %v1884_v55  ;;  %v931_v53 = vmul.f32 %v1323_v52, %v2069_v19  ;;  %v930_v55 = vmul.f32 %v1323_v52, %v2064_v16 }
 0x470   :  { %1747 = vmatpush3.bf16.msra.mxu0 %v1744_v54 }
 0x471   :  { %v1886_v57 = vpop.eup %1885  ;;  %1749 = vmatprep.subr.bf16.mxu0 %v1748_v56 }
 0x472   :  { %v1888_v59 = vpop.eup %1887 }
 0x473   :  { %v1752_v61 = vpack.c.bf16 %v1886_v57, %v1888_v59 }
 0x474   :  { %1751 = vmatpush3.bf16.msra.mxu0 %v1748_v56 }
 0x475   :  { %1753 = vmatprep.subr.bf16.mxu0 %v1752_v61 }
 0x478   :  { %1755 = vmatpush3.bf16.msra.mxu0 %v1752_v61 }
 0x47b   :  { %1584 = vmatmul.mubr.msk.f32.vlgmr.msra.gmra.mrb[16].mxu0 %vm125_vm0, %v2089_v37 }
 0x47c   :  { %1586 = vmatprep.mubr.msk.f32.mxu0 %vm125_vm0, %v2094_v38 }
 0x47f   :  { %1587 = vmatmul.mubr.msk.f32.gmra.mrb[18].mxu0 %vm125_vm0, %v2103_v39 }
 0x480   :  { %1589 = vmatprep.mubr.msk.f32.mxu0 %vm125_vm0, %v2108_v40 }
 0x483   :  { %1590 = vmatmul.mubr.msk.f32.gmra.mrb[20].mxu0 %vm125_vm0, %v2117_v41 }
 0x484   :  { %1592 = vmatprep.mubr.msk.f32.mxu0 %vm125_vm0, %v2122_v42 }
 0x487   :  { %1593 = vmatmul.mubr.msk.f32.gmra.mrb[22].mxu0 %vm125_vm0, %v2131_v43 }
 0x488   :  { %1639 = vmatprep.mubr.msk.f32.mxu0 %vm125_vm0, %v2053_v13  ;;  %v798_v13 = vmul.f32 %v1314_v62, %v2076_v24  ;;  %v933_v62 = vmul.f32 %v1323_v52, %v2074_v23 }
 0x54e   :  { %v1585_v0 = vpop.f32.mrb[16].mxu0 }
 0x54f   :  { %v801_v2 = vadd.f32 %v1585_v0, %v797_v63  ;;  %v752_v4 = vpop.f32.mrb[17].mxu0 }
 0x550   :  { %v800_v6 = vadd.f32 %v796_v1, %v752_v4  ;;  %v932_v1 = vmul.f32 %v1323_v52, %v2076_v24 }
 0x551   :  { %v805_v7 = vadd.f32 %v801_v2, %v2067_v18 }
 0x552   :  { %v804_v9 = vadd.f32 %v800_v6, %v2062_v15  ;;  %v1588_v10 = vpop.f32.mrb[18].mxu0 }
 0x553   :  { %1889 = vtanh.f32 %v805_v7  ;;  %v803_v11 = vadd.f32 %v1588_v10, %v799_v8  ;;  %v762_v12 = vpop.f32.mrb[19].mxu0 }
 0x554   :  { %1891 = vtanh.f32 %v804_v9  ;;  %v802_v14 = vadd.f32 %v798_v13, %v762_v12 }
 0x555   :  { %v807_v17 = vadd.f32 %v803_v11, %v2080_v27 }
 0x556   :  { %v806_v20 = vadd.f32 %v802_v14, %v2082_v28  ;;  %v1591_v21 = vpop.f32.mrb[20].mxu0 }
 0x557   :  { %1893 = vtanh.f32 %v807_v17  ;;  %v813_v22 = vadd.f32 %v1591_v21, %v2146_v58  ;;  %v772_v25 = vpop.f32.mrb[21].mxu0 }
 0x558   :  { %1895 = vtanh.f32 %v806_v20  ;;  %v812_v26 = vadd.f32 %v772_v25, %v2148_v60 }
 0x559   :  { %1897 = vtanh.f32 %v813_v22 }
 0x55a   :  { %1899 = vtanh.f32 %v812_v26  ;;  %v1594_v29 = vpop.f32.mrb[22].mxu0 }
 0x55b   :  { %v815_v30 = vadd.f32 %v1594_v29, %v2154_v3  ;;  %v782_v31 = vpop.f32.mrb[23].mxu0 }
 0x55c   :  { %v814_v32 = vadd.f32 %v782_v31, %v2156_v5 }
 0x55d   :  { %v1890_v33 = vpop.eup %1889  ;;  %1901 = vtanh.f32 %v815_v30 }
 0x55e   :  { %v1892_v34 = vpop.eup %1891  ;;  %1903 = vtanh.f32 %v814_v32 }
 0x55f   :  { %v1756_v35 = vpack.c.bf16 %v1890_v33, %v1892_v34 }
 0x561   :  { %v1894_v36 = vpop.eup %1893  ;;  %1757 = vmatprep.subr.bf16.mxu1 %v1756_v35 }
 0x562   :  { %v1896_v44 = vpop.eup %1895  ;;  %1759 = vmatpush3.bf16.msra.mxu1 %v1756_v35 }
 0x563   :  { %v1898_v45 = vpop.eup %1897  ;;  %v1760_v46 = vpack.c.bf16 %v1894_v36, %v1896_v44 }
 0x564   :  { %v1900_v47 = vpop.eup %1899 }
 0x565   :  { %1761 = vmatprep.subr.bf16.mxu1 %v1760_v46  ;;  %v1764_v48 = vpack.c.bf16 %v1898_v45, %v1900_v47 }
 0x566   :  { %1763 = vmatpush3.bf16.msra.mxu1 %v1760_v46 }
 0x567   :  { %v1902_v49 = vpop.eup %1901  ;;  %1765 = vmatprep.subr.bf16.mxu1 %v1764_v48 }
 0x568   :  { %v1904_v50 = vpop.eup %1903 }
 0x569   :  { %v1768_v51 = vpack.c.bf16 %v1902_v49, %v1904_v50 }
 0x56a   :  { %1767 = vmatpush3.bf16.msra.mxu1 %v1764_v48 }
 0x56b   :  { %1769 = vmatprep.subr.bf16.mxu1 %v1768_v51 }
 0x56e   :  { %1771 = vmatpush3.bf16.msra.mxu1 %v1768_v51 }
 0x571   :  { %1612 = vmatmul.mubr.msk.f32.vlgmr.msra.gmra.mrb[16].mxu1 %vm125_vm0, %v2089_v37 }
 0x572   :  { %1614 = vmatprep.mubr.msk.f32.mxu1 %vm125_vm0, %v2094_v38 }
 0x575   :  { %1615 = vmatmul.mubr.msk.f32.gmra.mrb[18].mxu1 %vm125_vm0, %v2103_v39 }
 0x576   :  { %1617 = vmatprep.mubr.msk.f32.mxu1 %vm125_vm0, %v2108_v40 }
 0x579   :  { %1618 = vmatmul.mubr.msk.f32.gmra.mrb[20].mxu1 %vm125_vm0, %v2117_v41 }
 0x57a   :  { %1620 = vmatprep.mubr.msk.f32.mxu1 %vm125_vm0, %v2122_v42 }
 0x57d   :  { %1621 = vmatmul.mubr.msk.f32.gmra.mrb[22].mxu1 %vm125_vm0, %v2131_v43 }
 0x57e   :  { %1667 = vmatprep.mubr.msk.f32.mxu1 %vm125_vm0, %v2108_v40 }
 0x644   :  { %v1613_v54 = vpop.f32.mrb[16].mxu1 }
 0x645   :  { %v935_v56 = vadd.f32 %v1613_v54, %v931_v53  ;;  %v886_v57 = vpop.f32.mrb[17].mxu1 }
 0x646   :  { %v934_v59 = vadd.f32 %v930_v55, %v886_v57 }
 0x647   :  { %v939_v61 = vadd.f32 %v935_v56, %v2067_v18 }
 0x648   :  { %v938_v63 = vadd.f32 %v934_v59, %v2062_v15  ;;  %v1616_v0 = vpop.f32.mrb[18].mxu1 }
 0x649   :  { %1905 = vtanh.f32 %v939_v61  ;;  %v937_v2 = vadd.f32 %v1616_v0, %v933_v62  ;;  %v896_v4 = vpop.f32.mrb[19].mxu1 }
 0x64a   :  { %1907 = vtanh.f32 %v938_v63  ;;  %v936_v6 = vadd.f32 %v932_v1, %v896_v4 }
 0x64b   :  { %v941_v7 = vadd.f32 %v937_v2, %v2080_v27 }
 0x64c   :  { %v940_v8 = vadd.f32 %v936_v6, %v2082_v28  ;;  %v1619_v9 = vpop.f32.mrb[20].mxu1 }
 0x64d   :  { %1909 = vtanh.f32 %v941_v7  ;;  %v947_v10 = vadd.f32 %v1619_v9, %v2146_v58  ;;  %v906_v13 = vpop.f32.mrb[21].mxu1  ;;  %v1970_v9 = vmov 0.0|0.0  }
 0x64e   :  { %1911 = vtanh.f32 %v940_v8  ;;  %v946_v11 = vadd.f32 %v906_v13, %v2148_v60 }
 0x64f   :  { %1913 = vtanh.f32 %v947_v10  ;;  %v1972_v10 = vmov 0.0  }
 0x650   :  { %1915 = vtanh.f32 %v946_v11  ;;  %v1622_v12 = vpop.f32.mrb[22].mxu1 }
 0x651   :  { %v949_v14 = vadd.f32 %v1622_v12, %v2154_v3  ;;  %v916_v17 = vpop.f32.mrb[23].mxu1 }
 0x652   :  { %v948_v20 = vadd.f32 %v916_v17, %v2156_v5 }
 0x653   :  { %v1906_v21 = vpop.eup %1905  ;;  %1917 = vtanh.f32 %v949_v14 }
 0x654   :  { %v1908_v22 = vpop.eup %1907  ;;  %1919 = vtanh.f32 %v948_v20 }
 0x655   :  { %v1772_v25 = vpack.c.bf16 %v1906_v21, %v1908_v22 }
 0x657   :  { %v1910_v26 = vpop.eup %1909  ;;  %1773 = vmatprep.subr.bf16.mxu0 %v1772_v25 }
 0x658   :  { %v1912_v29 = vpop.eup %1911  ;;  %1775 = vmatpush3.bf16.msra.mxu0 %v1772_v25 }
 0x659   :  { %v1914_v30 = vpop.eup %1913  ;;  %v1776_v31 = vpack.c.bf16 %v1910_v26, %v1912_v29 }
 0x65a   :  { %v1916_v32 = vpop.eup %1915 }
 0x65b   :  { %1777 = vmatprep.subr.bf16.mxu0 %v1776_v31  ;;  %v1780_v33 = vpack.c.bf16 %v1914_v30, %v1916_v32 }
 0x65c   :  { %1779 = vmatpush3.bf16.msra.mxu0 %v1776_v31 }
 0x65d   :  { %v1918_v34 = vpop.eup %1917  ;;  %1781 = vmatprep.subr.bf16.mxu0 %v1780_v33 }
 0x65e   :  { %v1920_v35 = vpop.eup %1919 }
 0x65f   :  { %v1784_v36 = vpack.c.bf16 %v1918_v34, %v1920_v35 }
 0x660   :  { %1783 = vmatpush3.bf16.msra.mxu0 %v1780_v33 }
 0x661   :  { %1785 = vmatprep.subr.bf16.mxu0 %v1784_v36 }
 0x664   :  { %1787 = vmatpush3.bf16.msra.mxu0 %v1784_v36 }
 0x665   :  { %1804 = vmatprep.subr.bf16.mxu0 %v1970_v9 }
 0x667   :  { %1640 = vmatmul.mubr.msk.f32.vlgmr.msra.gmra.mrb[24].mxu0 %vm125_vm0, %v2089_v37  ;;  %v1332_v37 = vld [vmem:[%s2372_s0 + $0x7] ss:$0 sm:$0xff] }
 0x668   :  { %1642 = vmatprep.mubr.msk.f32.mxu0 %vm125_vm0, %v2094_v38  ;;  %v1065_v38 = vmul.f32 %v1332_v37, %v2069_v19  ;;  %v1067_v48 = vmul.f32 %v1332_v37, %v2074_v23  ;;  %v1066_v51 = vmul.f32 %v1332_v37, %v2076_v24 }
 0x66b   :  { %1643 = vmatmul.mubr.msk.f32.gmra.mrb[26].mxu0 %vm125_vm0, %v2103_v39  ;;  %v1064_v39 = vmul.f32 %v1332_v37, %v2064_v16 }
 0x66c   :  { %1645 = vmatprep.mubr.msk.f32.mxu0 %vm125_vm0, %v2108_v40 }
 0x66f   :  { %1646 = vmatmul.mubr.msk.f32.gmra.mrb[28].mxu0 %vm125_vm0, %v2117_v41 }
 0x670   :  { %1648 = vmatprep.mubr.msk.f32.mxu0 %vm125_vm0, %v2122_v42 }
 0x673   :  { %1649 = vmatmul.mubr.msk.f32.gmra.mrb[30].mxu0 %vm125_vm0, %v2131_v43 }
 0x674   :  { %1681 = vmatprep.mubr.msk.f32.mxu0 %vm1971_vm1, %v1972_v10 }
 0x73a   :  { %v1641_v44 = vpop.f32.mrb[24].mxu0 }
 0x73b   :  { %v1069_v45 = vadd.f32 %v1641_v44, %v1065_v38  ;;  %v1020_v40 = vpop.f32.mrb[25].mxu0 }
 0x73c   :  { %v1068_v46 = vadd.f32 %v1064_v39, %v1020_v40 }
 0x73d   :  { %v1073_v47 = vadd.f32 %v1069_v45, %v2067_v18 }
 0x73e   :  { %v1072_v49 = vadd.f32 %v1068_v46, %v2062_v15  ;;  %v1644_v50 = vpop.f32.mrb[26].mxu0 }
 0x73f   :  { %1921 = vtanh.f32 %v1073_v47  ;;  %v1071_v52 = vadd.f32 %v1644_v50, %v1067_v48  ;;  %v1030_v53 = vpop.f32.mrb[27].mxu0 }
 0x740   :  { %1923 = vtanh.f32 %v1072_v49  ;;  %v1070_v19 = vadd.f32 %v1066_v51, %v1030_v53 }
 0x741   :  { %v1075_v54 = vadd.f32 %v1071_v52, %v2080_v27 }
 0x742   :  { %v1074_v16 = vadd.f32 %v1070_v19, %v2082_v28  ;;  %v1647_v55 = vpop.f32.mrb[28].mxu0 }
 0x743   :  { %1925 = vtanh.f32 %v1075_v54  ;;  %v1081_v18 = vadd.f32 %v1647_v55, %v2146_v58  ;;  %v1040_v56 = vpop.f32.mrb[29].mxu0 }
 0x744   :  { %1927 = vtanh.f32 %v1074_v16  ;;  %v1080_v15 = vadd.f32 %v1040_v56, %v2148_v60 }
 0x745   :  { %1929 = vtanh.f32 %v1081_v18 }
 0x746   :  { %1931 = vtanh.f32 %v1080_v15  ;;  %v1650_v23 = vpop.f32.mrb[30].mxu0 }
 0x747   :  { %v1083_v24 = vadd.f32 %v1650_v23, %v2154_v3  ;;  %v1050_v57 = vpop.f32.mrb[31].mxu0 }
 0x748   :  { %v1082_v59 = vadd.f32 %v1050_v57, %v2156_v5 }
 0x749   :  { %v1922_v61 = vpop.eup %1921  ;;  %1933 = vtanh.f32 %v1083_v24 }
 0x74a   :  { %v1924_v27 = vpop.eup %1923  ;;  %1935 = vtanh.f32 %v1082_v59 }
 0x74b   :  { %v1788_v28 = vpack.c.bf16 %v1922_v61, %v1924_v27 }
 0x74d   :  { %v1926_v62 = vpop.eup %1925  ;;  %1789 = vmatprep.subr.bf16.mxu1 %v1788_v28 }
 0x74e   :  { %v1928_v63 = vpop.eup %1927  ;;  %1791 = vmatpush3.bf16.msra.mxu1 %v1788_v28 }
 0x74f   :  { %v1930_v0 = vpop.eup %1929  ;;  %v1792_v1 = vpack.c.bf16 %v1926_v62, %v1928_v63 }
 0x750   :  { %v1932_v2 = vpop.eup %1931 }
 0x751   :  { %1793 = vmatprep.subr.bf16.mxu1 %v1792_v1  ;;  %v1796_v4 = vpack.c.bf16 %v1930_v0, %v1932_v2 }
 0x752   :  { %1795 = vmatpush3.bf16.msra.mxu1 %v1792_v1 }
 0x753   :  { %v1934_v6 = vpop.eup %1933  ;;  %1797 = vmatprep.subr.bf16.mxu1 %v1796_v4 }
 0x754   :  { %v1936_v7 = vpop.eup %1935 }
 0x755   :  { %v1800_v8 = vpack.c.bf16 %v1934_v6, %v1936_v7 }
 0x756   :  { %1799 = vmatpush3.bf16.msra.mxu1 %v1796_v4 }
 0x757   :  { %1801 = vmatprep.subr.bf16.mxu1 %v1800_v8 }
 0x75a   :  { %1803 = vmatpush3.bf16.msra.mxu1 %v1800_v8 }
 0x75d   :  { %1668 = vmatmul.mubr.msk.f32.vlgmr.msra.gmra.mrb[24].mxu1 %vm125_vm0, %v2117_v41 }
 0x75e   :  { %1670 = vmatprep.mubr.msk.f32.mxu1 %vm125_vm0, %v2122_v42 }
 0x761   :  { %1671 = vmatmul.mubr.msk.f32.gmra.mrb[26].mxu1 %vm125_vm0, %v2131_v43 }
 0x830   :  { %v1669_v13 = vpop.f32.mrb[24].mxu1 }
 0x831   :  { %v1160_v11 = vadd.f32 %v1669_v13, %v2146_v58  ;;  %v1154_v12 = vpop.f32.mrb[25].mxu1 }
 0x832   :  { %v1155_v14 = vadd.f32 %v1154_v12, %v2148_v60  ;;  %v1177_v60 = vld [vmem:[%s2377_s5] sm:$0x1] }
 0x833   :  { %1937 = vtanh.f32 %v1160_v11 }
 0x834   :  { %1939 = vtanh.f32 %v1155_v14  ;;  %v1672_v41 = vpop.f32.mrb[26].mxu1 }
 0x835   :  { %v1170_v17 = vadd.f32 %v1672_v41, %v2154_v3  ;;  %v1164_v42 = vpop.f32.mrb[27].mxu1  ;;  %v1179_v3 = vstv %s2378_s6 }
 0x836   :  { %v1165_v20 = vadd.f32 %v1164_v42, %v2156_v5 }
 0x837   :  { %1941 = vtanh.f32 %v1170_v17 }
 0x838   :  { %1943 = vtanh.f32 %v1165_v20 }
 0x83d   :  { %v1938_v43 = vpop.eup %1937 }
 0x83e   :  { %v1940_v21 = vpop.eup %1939 }
 0x83f   :  { %v1805_v22 = vpack.c.bf16 %v1938_v43, %v1940_v21 }
 0x841   :  { %v1942_v25 = vpop.eup %1941  ;;  %1806 = vmatpush3.bf16.msra.mxu0 %v1805_v22 }
 0x842   :  { %v1944_v26 = vpop.eup %1943  ;;  %1807 = vmatprep.subr.bf16.mxu0 %v1970_v9 }
 0x843   :  { %v1808_v58 = vpack.c.bf16 %v1942_v25, %v1944_v26 }
 0x845   :  { %1809 = vmatpush3.bf16.msra.mxu0 %v1808_v58 }
 0x848   :  { %1682 = vmatmul.mubr.msk.f32.vlgmr.msra.gmra.mrb[32].mxu0 %vm1180_vm2, %v1177_v60 }
 0x91b   :  { %v1250_v5 = vpop.f32.mrb[32].mxu0 }
 0x91c   :  { %v1251_v29 = vadd.f32 %v1250_v5, %v1179_v3  ;;  %v1683_v30 = vpop.f32.mrb[33].mxu0 }
 0x91e   :  { %1254 = vst [vmem:[#allocation3] sm:$0x1] %v1251_v29 }
 0x91f   :  { %1956 = shalt.err (!%p1953_p4)
}
 0x920   :  { %s1957_s12 = scalar_lea.hbm %s2379_s7, 16 }
 0x921   :  { %p1958_p5 = scmp.ne.s32.totalorder %s2379_s7, %s1957_s12  ;;  %p1961_p6 = scmp.lt.u32.totalorder %s1957_s12, %s2379_s7 }
 0x923   :  { %p1963_p7 = pnand %p1961_p6, %p1958_p5 }
 0x925   :  { %1966 = shalt.err (!%p1963_p7)
}
 0x926   :  { %1264 = dma.vmem_to_hbm [thread:$0]  %s1262_s8, 16, %s2379_s7, [#allocation4]  }
 0x927   :  { %1967 = dma.done.wait [#allocation4], 16  }
 0x928   :  { %1968 = vsyncadd [#allocation4], 4294967280 }
 0x929   :  { %1268 = vsyncpa [#allocation4], 1 }

</bundles_post_ra>
